<compile_context>
chip_gen: v7x
topology: tpu7x:2x2x1
jax: 0.10.0
libtpu: 0.0.40
codegen_flags: <defaults>
</compile_context>

<pallas_src>
from functools import partial

import jax
import jax.numpy as jnp
from jax.experimental import pallas as pl
from jax.experimental.pallas import tpu as pltpu

# ----------------------------- config (small) --------------------------------
N = 16         # batch (multiple of 16 -> bf16 sublane-tile aligned enqueue)
C = 32         # encoder input channels
H = W = 4      # spatial
HW = H * W
DIM = 128      # MoCo feature dim
K = 256        # queue size
TK = 128       # queue tile along K (production K=65536: use 2048-4096)
M_MOM = 0.999  # key-encoder momentum
T = 0.07       # temperature
EPS = 1e-12    # torch F.normalize eps

assert K % N == 0, "queue ptr invariant (no-wrap enqueue) requires K % N == 0"
assert K % TK == 0 and TK % 128 == 0
assert N % 16 == 0 and DIM % 128 == 0


# ----------------------------- fused Pallas kernel ----------------------------
def _moco_fused_kernel(ptr_ref,                                     # scalar prefetch (SMEM)
                       f2_ref, wq_ref, bq_ref, wk_ref, bk_ref, queue_ref,
                       lpos_ref, lneg_ref, wk_out_ref, bk_out_ref, queue_out_ref,
                       qn_sc, kn_sc, dma_sem):
    """Grid axis j tiles the queue along K.

    j == 0     : momentum update + fused encoder fc + normalize + l_pos (scratch qn/kn)
    every j    : l_neg tile = qn @ queue_tile.T (bf16 MXU, f32 acc), lane-dense store
    j == last  : enqueue N new keys in place via a tiny VMEM->HBM DMA
    """
    j = pl.program_id(0)
    m = jnp.float32(M_MOM)
    one_minus_m = jnp.float32(1.0 - M_MOM)
    inv_t = jnp.float32(1.0 / T)
    eps_sq = jnp.float32(EPS * EPS)

    @pl.when(j == 0)
    def _():
        # ---- momentum update of key encoder (VPU) ----
        wk_new = wk_ref[...] * m + wq_ref[...] * one_minus_m
        bk_new = bk_ref[...] * m + bq_ref[...] * one_minus_m
        wk_out_ref[...] = wk_new
        bk_out_ref[...] = bk_new

        # ---- fused fc: one MXU pass  [fq; fk] @ [wq | wk_new]  ----
        w_cat = jnp.concatenate([wq_ref[...], wk_new], axis=1)     # (C, 2*DIM)
        b_cat = jnp.concatenate([bq_ref[...], bk_new], axis=1)     # (1, 2*DIM)
        qk = jnp.dot(f2_ref[...], w_cat,
                     preferred_element_type=jnp.float32) + b_cat   # (2N, 2*DIM)
        q = qk[:N, :DIM]                                           # query branch
        k = qk[N:, DIM:]                                           # key branch (wk_new)

        # ---- F.normalize(x, dim=1): x * rsqrt(max(||x||^2, eps^2)) (EUP) ----
        qn = q * jax.lax.rsqrt(jnp.maximum(jnp.sum(q * q, axis=1, keepdims=True), eps_sq))
        kn = k * jax.lax.rsqrt(jnp.maximum(jnp.sum(k * k, axis=1, keepdims=True), eps_sq))

        # ---- l_pos (f32), keys kept as bf16 for the queue path ----
        lpos_ref[...] = jnp.sum(qn * kn, axis=1, keepdims=True) * inv_t
        qn_sc[...] = qn.astype(jnp.bfloat16)
        kn_sc[...] = kn.astype(jnp.bfloat16)

    # ---- l_neg for this queue tile (bf16 x bf16 -> f32 acc), lane-dense (N, TK) store ----
    l_neg = jax.lax.dot_general(
        qn_sc[...], queue_ref[...],
        dimension_numbers=(((1,), (1,)), ((), ())),
        preferred_element_type=jnp.float32)
    lneg_ref[...] = l_neg * inv_t

    # ---- dequeue & enqueue: write ONLY the N new rows, after all queue tiles were read ----
    # TODO(synk): wrap-around branch of _dequeue_and_enqueue not implemented (K % N == 0,
    #             ptr always a multiple of N, so the no-wrap path is always taken).
    @pl.when(j == pl.num_programs(0) - 1)
    def _():
        ptr = pl.multiple_of(ptr_ref[0], N)
        cp = pltpu.make_async_copy(kn_sc, queue_out_ref.at[pl.ds(ptr, N), :], dma_sem)
        cp.start()
        cp.wait()


# ----------------------------- wrapper -----------------------------------------
@partial(jax.jit, donate_argnums=(4, 5, 6))      # donate wk, bk, queue (in-place update)
def moco_forward_train(im_q, im_k, wq, bq, wk, bk, queue, queue_ptr):
    """MoCo.forward training branch (loss='supconv') on one device.

    Returns ((logits, labels), new_params, new_queue, new_queue_ptr); everything on device.
    """
    # GAP hoisted out of the kernel (XLA): (N,C,H,W) -> (N,C); stack query+key batches.
    fq = im_q.reshape(N, C, HW).mean(axis=-1)
    fk = im_k.reshape(N, C, HW).mean(axis=-1)
    f2 = jnp.concatenate([fq, fk], axis=0)                          # (2N, C)

    const = lambda j, ptr: (0, 0)

    grid_spec = pltpu.PrefetchScalarGridSpec(
        num_scalar_prefetch=1,                 # queue_ptr -> SMEM
        grid=(K // TK,),
        in_specs=[
            pl.BlockSpec((2 * N, C), const),                         # pooled features
            pl.BlockSpec((C, DIM), const),                           # wq
            pl.BlockSpec((1, DIM), const),                           # bq
            pl.BlockSpec((C, DIM), const),                           # wk
            pl.BlockSpec((1, DIM), const),                           # bk
            pl.BlockSpec((TK, DIM), lambda j, ptr: (j, 0)),          # queue tile (bf16)
        ],
        out_specs=[
            pl.BlockSpec((N, 1), const),                             # l_pos
            pl.BlockSpec((N, TK), lambda j, ptr: (0, j)),            # l_neg tile (lane-dense)
            pl.BlockSpec((C, DIM), const),                           # wk_new
            pl.BlockSpec((1, DIM), const),                           # bk_new
            pl.BlockSpec(memory_space=pl.ANY),                       # queue (in-place, HBM)
        ],
        scratch_shapes=[
            pltpu.VMEM((N, DIM), jnp.bfloat16),                      # qn
            pltpu.VMEM((N, DIM), jnp.bfloat16),                      # kn (enqueue source)
            pltpu.SemaphoreType.DMA,                                 # enqueue DMA sem
        ],
    )

    out_shapes = (
        jax.ShapeDtypeStruct((N, 1), jnp.float32),       # l_pos / T
        jax.ShapeDtypeStruct((N, K), jnp.float32),       # l_neg / T
        jax.ShapeDtypeStruct((C, DIM), jnp.float32),     # wk_new (aliased to wk)
        jax.ShapeDtypeStruct((1, DIM), jnp.float32),     # bk_new (aliased to bk)
        jax.ShapeDtypeStruct((K, DIM), jnp.bfloat16),    # queue  (aliased to queue)
    )

    l_pos, l_neg, wk_new, bk_new, queue_new = pl.pallas_call(
        _moco_fused_kernel,
        grid_spec=grid_spec,
        out_shape=out_shapes,
        # flat input indices (scalar prefetch included):
        # 0: queue_ptr, 1: f2, 2: wq, 3: bq, 4: wk, 5: bk, 6: queue
        input_output_aliases={4: 2, 5: 3, 6: 4},
        compiler_params=pltpu.CompilerParams(
            dimension_semantics=("arbitrary",),          # scratch carry + single enqueue DMA
            has_side_effects=True),                      # protect the DMA-written alias
    )(queue_ptr, f2, wq, bq, wk, bk, queue)

    # [l_pos | l_neg] built outside the kernel (keeps the big in-kernel store lane-dense).
    logits = jnp.concatenate([l_pos, l_neg], axis=1)                 # (N, 1+K), already / T
    labels = jnp.zeros((N,), dtype=jnp.int32)
    new_ptr = (queue_ptr + N) % K

    # TODO(synk): multi-device concat_all_gather / DDP batch shuffle-unshuffle and the
    #             eval branch (normalize(encoder_q(im_q))) are not part of this kernel.
    return (logits, labels), (wq, bq, wk_new, bk_new), queue_new, new_ptr


# ----------------------------- pure-JAX reference ------------------------------
def _reference(im_q, im_k, wq, bq, wk, bk, queue_rows_f32, ptr):
    hp = jax.lax.Precision.HIGHEST
    wk_new = wk * M_MOM + wq * (1.0 - M_MOM)
    bk_new = bk * M_MOM + bq * (1.0 - M_MOM)
    fq = im_q.reshape(N, C, HW).mean(axis=-1)
    fk = im_k.reshape(N, C, HW).mean(axis=-1)
    q = jnp.dot(fq, wq, precision=hp) + bq
    k = jnp.dot(fk, wk_new, precision=hp) + bk_new
    q = q / jnp.maximum(jnp.sqrt(jnp.sum(q * q, axis=1, keepdims=True)), EPS)
    k = k / jnp.maximum(jnp.sqrt(jnp.sum(k * k, axis=1, keepdims=True)), EPS)
    l_pos = jnp.sum(q * k, axis=1, keepdims=True)
    l_neg = jnp.dot(q, queue_rows_f32.T, precision=hp)
    logits = jnp.concatenate([l_pos, l_neg], axis=1) / T
    queue_new = queue_rows_f32.at[ptr:ptr + N].set(k)
    return logits, wk_new, bk_new, queue_new


# ----------------------------- main --------------------------------------------
if __name__ == "__main__":
    key = jax.random.PRNGKey(0)
    k_imq, k_imk, k_w, k_b, k_queue = jax.random.split(key, 5)

    im_q = jax.random.normal(k_imq, (N, C, H, W), dtype=jnp.float32)
    im_k = jax.random.normal(k_imk, (N, C, H, W), dtype=jnp.float32)

    # Synthetic encoder fc params; key encoder starts as a copy of the query encoder.
    wq = jax.random.normal(k_w, (C, DIM), dtype=jnp.float32) * 0.05
    bq = jax.random.normal(k_b, (1, DIM), dtype=jnp.float32) * 0.01
    wk = wq * 1.0   # distinct buffers (wk/bk/queue are donated + aliased in the kernel)
    bk = bq * 1.0

    # Queue stored ROW-major (K, DIM) in bf16; one unit-norm key per row
    # (equivalent to torch's F.normalize(randn(dim, K), dim=0)).
    q0 = jax.random.normal(k_queue, (K, DIM), dtype=jnp.float32)
    q0 = q0 / jnp.maximum(jnp.sqrt(jnp.sum(q0 * q0, axis=1, keepdims=True)), EPS)
    queue = q0.astype(jnp.bfloat16)
    queue_ptr = jnp.zeros((1,), dtype=jnp.int32)

    # Reference BEFORE the kernel call (wk/bk/queue buffers are donated to the call).
    ref_logits, ref_wk, ref_bk, ref_queue = _reference(
        im_q, im_k, wq, bq, wk, bk, queue.astype(jnp.float32), 0)
    jax.block_until_ready((ref_logits, ref_wk, ref_bk, ref_queue))

    (logits, labels), new_params, queue_new, queue_ptr_new = moco_forward_train(
        im_q, im_k, wq, bq, wk, bk, queue, queue_ptr)
    logits, labels, queue_new, queue_ptr_new = jax.block_until_ready(
        (logits, labels, queue_new, queue_ptr_new))

    # Shape / sanity checks.
    assert logits.shape == (N, 1 + K)
    assert labels.shape == (N,) and bool(jnp.all(labels == 0))
    assert queue_new.shape == (K, DIM) and queue_new.dtype == jnp.bfloat16
    assert int(queue_ptr_new[0]) == N % K
    assert bool(jnp.all(jnp.isfinite(logits)))

    # Numeric checks (bf16 queue path + MXU vs XLA f32: loose tolerances).
    assert bool(jnp.allclose(logits, ref_logits, rtol=1e-2, atol=2e-2))
    assert bool(jnp.allclose(new_params[2], ref_wk, rtol=1e-4, atol=1e-5))
    assert bool(jnp.allclose(new_params[3], ref_bk, rtol=1e-4, atol=1e-5))
    assert bool(jnp.allclose(queue_new.astype(jnp.float32), ref_queue,
                             rtol=1e-2, atol=1e-2))

    print("KERNEL_OK")
</pallas_src>

<mosaic_0001>
module attributes {stable_mosaic.version = 11 : i64} {
  func.func @_moco_fused_kernel(%arg0: i32, %arg1: memref<1xi32, #tpu.memory_space<smem>>, %arg2: memref<32x32xf32, #tpu.memory_space<vmem>>, %arg3: memref<32x128xf32, #tpu.memory_space<vmem>>, %arg4: memref<1x128xf32, #tpu.memory_space<vmem>>, %arg5: memref<32x128xf32, #tpu.memory_space<vmem>>, %arg6: memref<1x128xf32, #tpu.memory_space<vmem>>, %arg7: memref<128x128xbf16, #tpu.memory_space<vmem>>, %arg8: memref<16x1xf32, #tpu.memory_space<vmem>>, %arg9: memref<16x128xf32, #tpu.memory_space<vmem>>, %arg10: memref<32x128xf32, #tpu.memory_space<vmem>>, %arg11: memref<1x128xf32, #tpu.memory_space<vmem>>, %arg12: memref<256x128xbf16, #tpu.memory_space<any>>, %arg13: memref<16x128xbf16, #tpu.memory_space<vmem>>, %arg14: memref<16x128xbf16, #tpu.memory_space<vmem>>, %arg15: memref<!tpu.dma_semaphore, #tpu.memory_space<semaphore_mem>>) attributes {dimension_semantics = [#tpu.dimension_semantics<arbitrary>], iteration_bounds = array<i64: 2>, scalar_prefetch = 1 : i64, scratch_operands = 3 : i64, tpu.core_type = #tpu.core_type<tc>, window_params = [{pipeline_mode = #tpu.pipeline_mode<synchronous>, transform_indices = @transform_0, window_bounds = array<i64: 32, 32>}, {pipeline_mode = #tpu.pipeline_mode<synchronous>, transform_indices = @transform_1, window_bounds = array<i64: 32, 128>}, {pipeline_mode = #tpu.pipeline_mode<synchronous>, transform_indices = @transform_2, window_bounds = array<i64: 1, 128>}, {pipeline_mode = #tpu.pipeline_mode<synchronous>, transform_indices = @transform_3, window_bounds = array<i64: 32, 128>}, {pipeline_mode = #tpu.pipeline_mode<synchronous>, transform_indices = @transform_4, window_bounds = array<i64: 1, 128>}, {transform_indices = @transform_5, window_bounds = array<i64: 128, 128>}, {pipeline_mode = #tpu.pipeline_mode<synchronous>, transform_indices = @transform_6, window_bounds = array<i64: 16, 1>}, {transform_indices = @transform_7, window_bounds = array<i64: 16, 128>}, {pipeline_mode = #tpu.pipeline_mode<synchronous>, transform_indices = @transform_8, window_bounds = array<i64: 32, 128>}, {pipeline_mode = #tpu.pipeline_mode<synchronous>, transform_indices = @transform_9, window_bounds = array<i64: 1, 128>}, {}]} {
    %c0_i32 = arith.constant 0 : i32
    %0 = arith.cmpi eq, %arg0, %c0_i32 : i32
    %1 = arith.extui %0 : i1 to i32
    %cst = arith.constant 9.990000e-01 : f32
    %cst_0 = arith.constant 1.000000e-03 : f32
    %cst_1 = arith.constant 1.000000e-24 : f32
    %cst_2 = arith.constant 14.2857141 : f32
    %c0_i32_3 = arith.constant 0 : i32
    %2 = arith.cmpi ne, %1, %c0_i32_3 : i32
    scf.if %2 {
      %c0_12 = arith.constant 0 : index
      %c0_13 = arith.constant 0 : index
      %12 = vector.load %arg5[%c0_12, %c0_13] : memref<32x128xf32, #tpu.memory_space<vmem>>, vector<32x128xf32>
      %13 = vector.broadcast %cst : f32 to vector<32x128xf32>
      %14 = arith.mulf %12, %13 : vector<32x128xf32>
      %c0_14 = arith.constant 0 : index
      %c0_15 = arith.constant 0 : index
      %15 = vector.load %arg3[%c0_14, %c0_15] : memref<32x128xf32, #tpu.memory_space<vmem>>, vector<32x128xf32>
      %16 = vector.broadcast %cst_0 : f32 to vector<32x128xf32>
      %17 = arith.mulf %15, %16 : vector<32x128xf32>
      %18 = arith.addf %14, %17 : vector<32x128xf32>
      %c0_16 = arith.constant 0 : index
      %c0_17 = arith.constant 0 : index
      %19 = vector.load %arg6[%c0_16, %c0_17] : memref<1x128xf32, #tpu.memory_space<vmem>>, vector<1x128xf32>
      %20 = vector.broadcast %cst : f32 to vector<1x128xf32>
      %21 = arith.mulf %19, %20 : vector<1x128xf32>
      %c0_18 = arith.constant 0 : index
      %c0_19 = arith.constant 0 : index
      %22 = vector.load %arg4[%c0_18, %c0_19] : memref<1x128xf32, #tpu.memory_space<vmem>>, vector<1x128xf32>
      %23 = vector.broadcast %cst_0 : f32 to vector<1x128xf32>
      %24 = arith.mulf %22, %23 : vector<1x128xf32>
      %25 = arith.addf %21, %24 : vector<1x128xf32>
      %c0_20 = arith.constant 0 : index
      %c0_21 = arith.constant 0 : index
      %26 = vector.load %arg10[%c0_20, %c0_21] : memref<32x128xf32, #tpu.memory_space<vmem>>, vector<32x128xf32>
      tpu.vector_store %arg10[%c0_20, %c0_21], %18 {strides = array<i32>} : memref<32x128xf32, #tpu.memory_space<vmem>>, vector<32x128xf32>,
      %c0_22 = arith.constant 0 : index
      %c0_23 = arith.constant 0 : index
      %27 = vector.load %arg11[%c0_22, %c0_23] : memref<1x128xf32, #tpu.memory_space<vmem>>, vector<1x128xf32>
      tpu.vector_store %arg11[%c0_22, %c0_23], %25 {strides = array<i32>} : memref<1x128xf32, #tpu.memory_space<vmem>>, vector<1x128xf32>,
      %c0_24 = arith.constant 0 : index
      %c0_25 = arith.constant 0 : index
      %28 = vector.load %arg3[%c0_24, %c0_25] : memref<32x128xf32, #tpu.memory_space<vmem>>, vector<32x128xf32>
      %29 = tpu.concatenate %28, %18 in 1 : vector<32x128xf32>, vector<32x128xf32> -> vector<32x256xf32>
      %c0_26 = arith.constant 0 : index
      %c0_27 = arith.constant 0 : index
      %30 = vector.load %arg4[%c0_26, %c0_27] : memref<1x128xf32, #tpu.memory_space<vmem>>, vector<1x128xf32>
      %31 = tpu.concatenate %30, %25 in 1 : vector<1x128xf32>, vector<1x128xf32> -> vector<1x256xf32>
      %c0_28 = arith.constant 0 : index
      %c0_29 = arith.constant 0 : index
      %32 = vector.load %arg2[%c0_28, %c0_29] : memref<32x32xf32, #tpu.memory_space<vmem>>, vector<32x32xf32>
      %cst_30 = arith.constant dense<0.000000e+00> : vector<32x256xf32>
      %33 = tpu.matmul %32, %29, %cst_30 {dimension_numbers = #tpu.dot_dimension_numbers<[1], [0], [0], [1], [0, 0, 1, 1], [], []>} : vector<32x32xf32>, vector<32x256xf32>, vector<32x256xf32> -> vector<32x256xf32>
      %34 = vector.broadcast %31 : vector<1x256xf32> to vector<32x256xf32>
      %35 = arith.addf %33, %34 : vector<32x256xf32>
      %36 = vector.extract_strided_slice %35 {offsets = [0, 0], sizes = [16, 128], strides = [1, 1]} : vector<32x256xf32> to vector<16x128xf32>
      %37 = vector.extract_strided_slice %35 {offsets = [16, 128], sizes = [16, 128], strides = [1, 1]} : vector<32x256xf32> to vector<16x128xf32>
      %38 = arith.mulf %36, %36 : vector<16x128xf32>
      %cst_31 = arith.constant dense<0.000000e+00> : vector<16xf32>
      %39 = vector.multi_reduction <add>, %38, %cst_31 [1] : vector<16x128xf32> to vector<16xf32>
      %40 = vector.shape_cast %39 : vector<16xf32> to vector<16x1xf32>
      %41 = vector.broadcast %cst_1 : f32 to vector<16x1xf32>
      %42 = arith.maximumf %40, %41 : vector<16x1xf32>
      %43 = math.rsqrt %42 : vector<16x1xf32>
      %44 = vector.broadcast %43 : vector<16x1xf32> to vector<16x128xf32>
      %45 = arith.mulf %36, %44 : vector<16x128xf32>
      %46 = arith.mulf %37, %37 : vector<16x128xf32>
      %cst_32 = arith.constant dense<0.000000e+00> : vector<16xf32>
      %47 = vector.multi_reduction <add>, %46, %cst_32 [1] : vector<16x128xf32> to vector<16xf32>
      %48 = vector.shape_cast %47 : vector<16xf32> to vector<16x1xf32>
      %49 = vector.broadcast %cst_1 : f32 to vector<16x1xf32>
      %50 = arith.maximumf %48, %49 : vector<16x1xf32>
      %51 = math.rsqrt %50 : vector<16x1xf32>
      %52 = vector.broadcast %51 : vector<16x1xf32> to vector<16x128xf32>
      %53 = arith.mulf %37, %52 : vector<16x128xf32>
      %54 = arith.mulf %45, %53 : vector<16x128xf32>
      %cst_33 = arith.constant dense<0.000000e+00> : vector<16xf32>
      %55 = vector.multi_reduction <add>, %54, %cst_33 [1] : vector<16x128xf32> to vector<16xf32>
      %56 = vector.shape_cast %55 : vector<16xf32> to vector<16x1xf32>
      %57 = vector.broadcast %cst_2 : f32 to vector<16x1xf32>
      %58 = arith.mulf %56, %57 : vector<16x1xf32>
      %c0_34 = arith.constant 0 : index
      %c0_35 = arith.constant 0 : index
      %59 = vector.load %arg8[%c0_34, %c0_35] : memref<16x1xf32, #tpu.memory_space<vmem>>, vector<16x1xf32>
      tpu.vector_store %arg8[%c0_34, %c0_35], %58 {strides = array<i32>} : memref<16x1xf32, #tpu.memory_space<vmem>>, vector<16x1xf32>,
      %60 = arith.truncf %45 : vector<16x128xf32> to vector<16x128xbf16>
      %c0_36 = arith.constant 0 : index
      %c0_37 = arith.constant 0 : index
      %61 = vector.load %arg13[%c0_36, %c0_37] : memref<16x128xbf16, #tpu.memory_space<vmem>>, vector<16x128xbf16>
      tpu.vector_store %arg13[%c0_36, %c0_37], %60 {strides = array<i32>} : memref<16x128xbf16, #tpu.memory_space<vmem>>, vector<16x128xbf16>,
      %62 = arith.truncf %53 : vector<16x128xf32> to vector<16x128xbf16>
      %c0_38 = arith.constant 0 : index
      %c0_39 = arith.constant 0 : index
      %63 = vector.load %arg14[%c0_38, %c0_39] : memref<16x128xbf16, #tpu.memory_space<vmem>>, vector<16x128xbf16>
      tpu.vector_store %arg14[%c0_38, %c0_39], %62 {strides = array<i32>} : memref<16x128xbf16, #tpu.memory_space<vmem>>, vector<16x128xbf16>,
    } else {
    }
    %c0 = arith.constant 0 : index
    %c0_4 = arith.constant 0 : index
    %3 = vector.load %arg13[%c0, %c0_4] : memref<16x128xbf16, #tpu.memory_space<vmem>>, vector<16x128xbf16>
    %c0_5 = arith.constant 0 : index
    %c0_6 = arith.constant 0 : index
    %4 = vector.load %arg7[%c0_5, %c0_6] : memref<128x128xbf16, #tpu.memory_space<vmem>>, vector<128x128xbf16>
    %cst_7 = arith.constant dense<0.000000e+00> : vector<16x128xf32>
    %5 = tpu.matmul %3, %4, %cst_7 {dimension_numbers = #tpu.dot_dimension_numbers<[1], [1], [0], [0], [0, 0, 1, 0], [], []>} : vector<16x128xbf16>, vector<128x128xbf16>, vector<16x128xf32> -> vector<16x128xf32>
    %cst_8 = arith.constant 14.2857141 : f32
    %6 = vector.broadcast %cst_8 : f32 to vector<16x128xf32>
    %7 = arith.mulf %5, %6 : vector<16x128xf32>
    %c0_9 = arith.constant 0 : index
    %c0_10 = arith.constant 0 : index
    %8 = vector.load %arg9[%c0_9, %c0_10] : memref<16x128xf32, #tpu.memory_space<vmem>>, vector<16x128xf32>
    tpu.vector_store %arg9[%c0_9, %c0_10], %7 {strides = array<i32>} : memref<16x128xf32, #tpu.memory_space<vmem>>, vector<16x128xf32>,
    %c1_i32 = arith.constant 1 : i32
    %9 = arith.cmpi eq, %arg0, %c1_i32 : i32
    %10 = arith.extui %9 : i1 to i32
    %c0_i32_11 = arith.constant 0 : i32
    %11 = arith.cmpi ne, %10, %c0_i32_11 : i32
    scf.if %11 {
      %c0_12 = arith.constant 0 : index
      %12 = memref.load %arg1[%c0_12] : memref<1xi32, #tpu.memory_space<smem>>
      %13 = tpu.assume_multiple %12, 16 : i32
      %c0_i32_13 = arith.constant 0 : i32
      %14 = tpu.memref_slice %arg12[%13, %c0_i32_13] : memref<256x128xbf16, #tpu.memory_space<any>> -> memref<16x128xbf16, #tpu.memory_space<any>>
      tpu.enqueue_dma source(%arg14 : memref<16x128xbf16, #tpu.memory_space<vmem>>) target(%14 : memref<16x128xbf16, #tpu.memory_space<any>>) target_semaphore(%arg15 : memref<!tpu.dma_semaphore, #tpu.memory_space<semaphore_mem>>)
      %c0_i32_14 = arith.constant 0 : i32
      %15 = tpu.memref_slice %arg12[%13, %c0_i32_14] : memref<256x128xbf16, #tpu.memory_space<any>> -> memref<16x128xbf16, #tpu.memory_space<any>>
      tpu.wait_dma2 semaphore(%arg15 : memref<!tpu.dma_semaphore, #tpu.memory_space<semaphore_mem>>) src(%arg14 : memref<16x128xbf16, #tpu.memory_space<vmem>>) dst(%15 : memref<16x128xbf16, #tpu.memory_space<any>>)
    } else {
    }
    return
  }
  func.func @transform_0(%arg0: i32, %arg1: memref<1xi32, #tpu.memory_space<smem>>) -> (i32, i32) {
    %c0_i32 = arith.constant 0 : i32
    %c0_i32_0 = arith.constant 0 : i32
    %c0_i32_1 = arith.constant 0 : i32
    return %c0_i32, %c0_i32_0 : i32, i32
  }
  func.func @transform_1(%arg0: i32, %arg1: memref<1xi32, #tpu.memory_space<smem>>) -> (i32, i32) {
    %c0_i32 = arith.constant 0 : i32
    %c0_i32_0 = arith.constant 0 : i32
    %c0_i32_1 = arith.constant 0 : i32
    return %c0_i32, %c0_i32_0 : i32, i32
  }
  func.func @transform_2(%arg0: i32, %arg1: memref<1xi32, #tpu.memory_space<smem>>) -> (i32, i32) {
    %c0_i32 = arith.constant 0 : i32
    %c0_i32_0 = arith.constant 0 : i32
    %c0_i32_1 = arith.constant 0 : i32
    return %c0_i32, %c0_i32_0 : i32, i32
  }
  func.func @transform_3(%arg0: i32, %arg1: memref<1xi32, #tpu.memory_space<smem>>) -> (i32, i32) {
    %c0_i32 = arith.constant 0 : i32
    %c0_i32_0 = arith.constant 0 : i32
    %c0_i32_1 = arith.constant 0 : i32
    return %c0_i32, %c0_i32_0 : i32, i32
  }
  func.func @transform_4(%arg0: i32, %arg1: memref<1xi32, #tpu.memory_space<smem>>) -> (i32, i32) {
    %c0_i32 = arith.constant 0 : i32
    %c0_i32_0 = arith.constant 0 : i32
    %c0_i32_1 = arith.constant 0 : i32
    return %c0_i32, %c0_i32_0 : i32, i32
  }
  func.func @transform_5(%arg0: i32, %arg1: memref<1xi32, #tpu.memory_space<smem>>) -> (i32, i32) {
    %c0_i32 = arith.constant 0 : i32
    %c0_i32_0 = arith.constant 0 : i32
    return %arg0, %c0_i32 : i32, i32
  }
  func.func @transform_6(%arg0: i32, %arg1: memref<1xi32, #tpu.memory_space<smem>>) -> (i32, i32) {
    %c0_i32 = arith.constant 0 : i32
    %c0_i32_0 = arith.constant 0 : i32
    %c0_i32_1 = arith.constant 0 : i32
    return %c0_i32, %c0_i32_0 : i32, i32
  }
  func.func @transform_7(%arg0: i32, %arg1: memref<1xi32, #tpu.memory_space<smem>>) -> (i32, i32) {
    %c0_i32 = arith.constant 0 : i32
    %c0_i32_0 = arith.constant 0 : i32
    return %c0_i32, %arg0 : i32, i32
  }
  func.func @transform_8(%arg0: i32, %arg1: memref<1xi32, #tpu.memory_space<smem>>) -> (i32, i32) {
    %c0_i32 = arith.constant 0 : i32
    %c0_i32_0 = arith.constant 0 : i32
    %c0_i32_1 = arith.constant 0 : i32
    return %c0_i32, %c0_i32_0 : i32, i32
  }
  func.func @transform_9(%arg0: i32, %arg1: memref<1xi32, #tpu.memory_space<smem>>) -> (i32, i32) {
    %c0_i32 = arith.constant 0 : i32
    %c0_i32_0 = arith.constant 0 : i32
    %c0_i32_1 = arith.constant 0 : i32
    return %c0_i32, %c0_i32_0 : i32, i32
  }
}

</mosaic_0001>

<bundles_post_ra>
// kernel: moco_forward_train.1
= control target key start
LH: loop header
LB: loop body
LE: loop exit
PB: predicated region body
PF: predicated region fallthrough
CT: control target
= control target key end

     0   :  { %s1145_s0 = inlined_call_operand.<no memory space> [shape: s32[1], index: 0, kind: input, shape index: {}]   ;;  %s1146_s1 = inlined_call_operand.vmem [shape: f32[32,32], index: 1, kind: input, shape index: {}]   ;;  %s1147_s2 = inlined_call_operand.vmem [shape: f32[32,128], index: 2, kind: input, shape index: {}]   ;;  %s1148_s3 = inlined_call_operand.vmem [shape: f32[1,128], index: 3, kind: input, shape index: {}]   ;;  %s1149_s4 = inlined_call_operand.vmem [shape: f32[32,128], index: 4, kind: input, shape index: {}, may-alias: {4,9}]   ;;  %s1150_s5 = inlined_call_operand.vmem [shape: f32[1,128], index: 5, kind: input, shape index: {}, may-alias: {5,10}]   ;;  %s1151_s6 = inlined_call_operand.vmem [shape: bf16[256,128], index: 6, kind: input, shape index: {}, may-alias: {6,11}]   ;;  %s1152_s7 = inlined_call_operand.vmem [shape: f32[16,1], index: 7, kind: output, shape index: {0}]   ;;  %s1153_s8 = inlined_call_operand.vmem [shape: f32[16,256], index: 8, kind: output, shape index: {1}]   ;;  %s1154_s9 = inlined_call_operand.vmem [shape: f32[32,128], index: 9, kind: output, shape index: {2}, may-alias: {4,9}]   ;;  %s1155_s10 = inlined_call_operand.vmem [shape: f32[1,128], index: 10, kind: output, shape index: {3}, may-alias: {5,10}]   ;;  %s1156_s11 = inlined_call_operand.vmem [shape: bf16[256,128], index: 11, kind: output, shape index: {4}, may-alias: {6,11}]  }
   0x1   :  { %17 = sst [smem:[#allocation6]] %s1145_s0 }
   0x2   :  { %s1012_s19 = smov 0   ;;  %s1014_s20 = smov 0  }
   0x3   :  { %s1016_s21 = smov 0  }
   0x4 LB: > { %s1023_s22 = sadd.s32 4294967295, %s944_s21   ;;  %s1025_s0 = sadd.s32 1, %s944_s21   ;;  %s944_s21 = sphi %s1016_s21, %s1160_s21   ;;  %s940_s20 = sphi %s1014_s20, %s1159_s20   ;;  %s936_s19 = sphi %s1012_s19, %s1158_s19  }
   0x5   : > { %s179_s23 = ssub.s32 %s944_s21, %s1025_s0  ;;  %s182_s24 = sadd.s32 1, %s940_s20 }
   0x6   : > { %p180_p0 = scmp.eq.s32.totalorder %s179_s23, 0  ;;  %p192_p1 = scmp.ne.s32.totalorder %s940_s20, %s936_s19 }
   0x7   : > { %p193_p2 = scmp.eq.s32.totalorder %s1023_s22, 1  ;;  %p811_p3 = scmp.ge.s32.totalorder %s944_s21, 1 }
   0x8   : > { %s1032_s25 = scalar_select %p180_p0, %s940_s20, %s182_s24  }
   0x9   : > { %p1034_p4 = por %p193_p2, %p192_p1  ;;  %p283_p5 = scmp.lt.s32.totalorder %s944_s21, 3 }
   0xb   : > { %p284_p6 = pnand %p811_p3, %p283_p5 }
   0xc   : > { %s311_s27 = sand.u32 (!%p284_p6), 1, %s936_s19   ;;  %s813_s28 = sshll.u32 (!%p284_p6), %s1023_s22, 4 }
   0xd   : > { %287 = sbr.rel (%p284_p6) target bundleno = 855 (0x357), region = 44  ;;  %s812_s29 = sshll.u32 (!%p284_p6), %s311_s27, 4 }
   0xe   : > { %p319_p7 = scmp.lt.s32.totalorder (!%p284_p6), %s813_s28, 31  ;;  %s1044_s15 = scalar_lea.vmem (!%p284_p6), [#allocation7], %s812_s29 }
   0xf   : > { %p815_p8 = scmp.ne.s32.totalorder (!%p284_p6), %s1023_s22, 0 }
  0x14   : > { %s1162_s28 = smov (!%p319_p7, %s813_s28), 31  ;;  %328 = sbr.rel (%p815_p8) target bundleno = 562 (0x232), region = 48 }
  0x15   : > { %s814_s30 = sshll.u32 %s1162_s28, 2  ;;  %v329_v0 = vld [vmem:[%s1149_s4] sm:$0xff] (!%p815_p8)  ;;  %v330_v1 = vld [vmem:[%s1149_s4 + $0x8] sm:$0xff] (!%p815_p8)  ;;  %v331_v6 = vld [vmem:[%s1149_s4 + $0x10] sm:$0xff] (!%p815_p8)  ;;  %v946_v7 = vmov (!%p815_p8), 0.0   ;;  %vm376_vm0 = vcmask (!%p815_p8), 261120   ;;  %v372_v34 = vlaneseq (!%p815_p8) }
  0x16   : > { %s1042_s14 = scalar_lea.vmem %s1151_s6, %s814_s30  ;;  %v337_v2 = vld [vmem:[%s1147_s2] sm:$0xff] (!%p815_p8)  ;;  %v333_v3 = vmul.f32 (!%p815_p8), 0.999, %v329_v0  ;;  %v334_v4 = vmul.f32 (!%p815_p8), 0.999, %v330_v1  ;;  %v338_v5 = vld [vmem:[%s1147_s2 + $0x8] sm:$0xff] (!%p815_p8)  ;;  %453 = vmatprep.mubr.f32.mxu0 (!%p815_p8), %v946_v7  ;;  %463 = vmatprep.mubr.f32.mxu1 (!%p815_p8), %v946_v7 }
  0x17   : > { %v341_v8 = vmul.f32 (!%p815_p8), 0.001, %v337_v2  ;;  %v342_v9 = vmul.f32 (!%p815_p8), 0.001, %v338_v5  ;;  %v332_v10 = vld [vmem:[%s1149_s4 + $0x18] sm:$0xff] (!%p815_p8)  ;;  %v339_v11 = vld [vmem:[%s1147_s2 + $0x10] sm:$0xff] (!%p815_p8)  ;;  %v867_v19 = vpack.c.bf16 (!%p815_p8), %v338_v5, %v337_v2 }
  0x18   : > { %v335_v12 = vmul.f32 (!%p815_p8), 0.999, %v331_v6  ;;  %v336_v13 = vmul.f32 (!%p815_p8), 0.999, %v332_v10  ;;  %v340_v14 = vld [vmem:[%s1147_s2 + $0x18] sm:$0xff] (!%p815_p8)  ;;  %v364_v25 = vld [vmem:[%s1146_s1] sm:$0xff] (!%p815_p8) }
  0x19   : > { %v345_v15 = vadd.f32 (!%p815_p8), %v341_v8, %v333_v3  ;;  %v346_v16 = vadd.f32 (!%p815_p8), %v342_v9, %v334_v4  ;;  %v343_v17 = vmul.f32 (!%p815_p8), 0.001, %v339_v11  ;;  %v344_v18 = vmul.f32 (!%p815_p8), 0.001, %v340_v14  ;;  %v366_v26 = vld [vmem:[%s1146_s1 + $0x10] sm:$0xff] (!%p815_p8)  ;;  %v365_v27 = vld [vmem:[%s1146_s1 + $0x8] sm:$0xff] (!%p815_p8) }
  0x1a   : > { %v871_v24 = vpack.c.bf16 (!%p815_p8), %v340_v14, %v339_v11  ;;  %v367_v28 = vld [vmem:[%s1146_s1 + $0x18] sm:$0xff] (!%p815_p8)  ;;  %v349_v29 = vld [vmem:[%s1150_s5] sm:$0x1] (!%p815_p8)  ;;  %v373_v35 = vshrl.u32 (!%p815_p8), %v372_v34, 7  ;;  %vm506_vm1 = vcmask (!%p815_p8), 7168  }
  0x1b   : > { %354 = vst [vmem:[%s1154_s9] sm:$0xff] %v345_v15  ;;  %355 = vst [vmem:[%s1154_s9 + $0x8] sm:$0xff] %v346_v16  ;;  %v865_v20 = vpack.c.bf16 %v346_v16, %v345_v15  ;;  %v347_v21 = vadd.f32 %v343_v17, %v335_v12  ;;  %v348_v22 = vadd.f32 %v344_v18, %v336_v13  ;;  %v351_v30 = vld [vmem:[%s1148_s3] sm:$0x1]  ;;  %v350_v31 = vmul.f32 0.999, %v349_v29 }
  0x1c   : > { %v352_v32 = vmul.f32 0.001, %v351_v30  ;;  %v374_v36 = vsub.s32 0, %v373_v35  ;;  %v816_v37 = vld [vmem:[%s1148_s3] ss:$0 sm:$0xff] }
  0x1d   : > { %866 = vmatprep.subr.bf16.mxu0 %v865_v20  ;;  %873 = vmatprep.subr.bf16.mxu1 %v865_v20  ;;  %356 = vst [vmem:[%s1154_s9 + $0x10] sm:$0xff] %v347_v21  ;;  %357 = vst [vmem:[%s1154_s9 + $0x18] sm:$0xff] %v348_v22  ;;  %v869_v23 = vpack.c.bf16 %v348_v22, %v347_v21 }
  0x1e   : > { %868 = vmatpush1.bf16.msra.mxu0 %v867_v19  ;;  %875 = vmatpush1.bf16.msra.mxu1 %v867_v19  ;;  %v353_v33 = vadd.f32 %v352_v32, %v350_v31 }
  0x1f   : > { %870 = vmatprep.subr.bf16.mxu0 %v869_v23  ;;  %874 = vmatprep.subr.bf16.mxu1 %v869_v23 }
  0x20   : > { %358 = vst [vmem:[%s1155_s10] sm:$0x1] %v353_v33  ;;  %v375_v38 = vrot.slane %v353_v33, %v374_v36 }
  0x22   : > { %872 = vmatpush1.bf16.msra.mxu0 %v871_v24  ;;  %876 = vmatpush1.bf16.msra.mxu1 %v871_v24 }
  0x25   : > { %817 = vmatmul.mubr.msk.f32.vlgmr.msra.gmra.mrb[0].mxu0 %vm376_vm0, %v364_v25  ;;  %819 = vmatmul.mubr.msk.f32.vlgmr.msra.gmra.mrb[0].mxu1 %vm376_vm0, %v366_v26 }
  0x26   : > { %458 = vmatprep.mubr.f32.mxu0 %v946_v7  ;;  %468 = vmatprep.mubr.f32.mxu1 %v946_v7 }
  0x29   : > { %818 = vmatmul.mubr.msk.f32.gmra.mrb[2].mxu0 %vm376_vm0, %v365_v27  ;;  %820 = vmatmul.mubr.msk.f32.gmra.mrb[2].mxu1 %vm376_vm0, %v367_v28 }
  0xf8   : > { %v455_v39 = vpop.f32.mrb[0].mxu0  ;;  %v465_v40 = vpop.f32.mrb[0].mxu1 }
  0xf9   : > { %v456_v41 = vadd.f32 %v816_v37, %v455_v39  ;;  %v457_v42 = vpop.f32.mrb[1].mxu0  ;;  %v466_v43 = vpop.f32.mrb[1].mxu1 }
  0xfa   : > { %v467_v44 = vadd.f32 %v466_v43, %v375_v38 }
  0xfb   : > { %v474_v45 = vmul.f32 %v456_v41, %v456_v41 }
  0xfc   : > { %v460_v46 = vpop.f32.mrb[2].mxu0  ;;  %v470_v47 = vpop.f32.mrb[2].mxu1  ;;  %v486_v48 = vmul.f32 %v467_v44, %v467_v44 }
  0xfd   : > { %v461_v49 = vadd.f32 %v816_v37, %v460_v46  ;;  %v462_v50 = vpop.f32.mrb[3].mxu0  ;;  %v471_v51 = vpop.f32.mrb[3].mxu1  ;;  %476 = vadd.xlane.f32.xlu0 %v474_v45 }
  0xfe   : > { %v472_v52 = vadd.f32 %v471_v51, %v375_v38  ;;  %488 = vadd.xlane.f32.xlu1 %v486_v48 }
  0xff   : > { %v475_v53 = vmul.f32 %v461_v49, %v461_v49 }
 0x100   : > { %v487_v54 = vmul.f32 %v472_v52, %v472_v52 }
 0x101   : > { %478 = vadd.xlane.f32.xlu0 %v475_v53 }
 0x102   : > { %490 = vadd.xlane.f32.xlu1 %v487_v54 }
 0x18a   : > { %v477_v55 = vpop.xlane.xlu0 %476 }
 0x18b   : > { %v480_v56 = vmax.f32 %v477_v55, 1e-24  ;;  %v489_v57 = vpop.xlane.xlu1 %488 }
 0x18c   : > { %v492_v58 = vmax.f32 %v489_v57, 1e-24 }
 0x18d   : > { %904 = vrsqrt.f32 %v480_v56 }
 0x18e   : > { %906 = vrsqrt.f32 %v492_v58  ;;  %v479_v59 = vpop.xlane.xlu0 %478 }
 0x18f   : > { %v481_v60 = vmax.f32 %v479_v59, 1e-24  ;;  %v491_v61 = vpop.xlane.xlu1 %490 }
 0x190   : > { %v493_v62 = vmax.f32 %v491_v61, 1e-24 }
 0x191   : > { %908 = vrsqrt.f32 %v481_v60 }
 0x192   : > { %910 = vrsqrt.f32 %v493_v62 }
 0x197   : > { %v905_v63 = vpop.eup %904 }
 0x198   : > { %v907_v0 = vpop.eup %906  ;;  %v484_v1 = vmul.f32 %v905_v63, %v456_v41 }
 0x199   : > { %v496_v2 = vmul.f32 %v907_v0, %v467_v44 }
 0x19b   : > { %v909_v3 = vpop.eup %908  ;;  %v498_v4 = vmul.f32 %v496_v2, %v484_v1 }
 0x19c   : > { %v911_v5 = vpop.eup %910  ;;  %v485_v6 = vmul.f32 %v909_v3, %v461_v49 }
 0x19d   : > { %500 = vadd.xlane.f32.xlu0 %v498_v4  ;;  %v497_v7 = vmul.f32 %v911_v5, %v472_v52 }
 0x19e   : > { %v509_v8 = vpack.c.bf16 %v485_v6, %v484_v1 }
 0x19f   : > { %v499_v9 = vmul.f32 %v497_v7, %v485_v6  ;;  %v511_v10 = vpack.c.bf16 %v497_v7, %v496_v2 }
 0x1a0   : > { %510 = vst [vmem:[#allocation2] sm:$0xff] %v509_v8 }
 0x1a1   : > { %512 = vst [vmem:[#allocation3] sm:$0xff] %v511_v10  ;;  %502 = vadd.xlane.f32.xlu1 %v499_v9 }
 0x22a   : > { %v501_v11 = vpop.xlane.xlu0 %500 }
 0x22b   : > { %v504_v12 = vmul.f32 14.285714, %v501_v11 }
 0x22d   : > { %507 = vst.msk [vmem:[%s1152_s7] sm:$0xff] %vm506_vm1, %v504_v12 }
 0x22e   : > { %v503_v13 = vpop.xlane.xlu1 %502 }
 0x22f   : > { %v505_v14 = vmul.f32 14.285714, %v503_v13 }
 0x231   : > { %508 = vst.msk [vmem:[%s1152_s7 + $0x8] sm:$0xff] %vm506_vm1, %v505_v14 }
 0x232 PF: > { %v912_v15 = vld [vmem:[%s1042_s14] sm:$0xff]   ;;  %v947_v16 = vmov 0.0   ;;  %vm948_vm2 = vmmov 0   ;;  %v913_v17 = vld [vmem:[%s1042_s14 + $0x8] sm:$0xff]   ;;  %v914_v18 = vld [vmem:[%s1042_s14 + $0x10] sm:$0xff]   ;;  %p829_p9 = scmp.ne.s32.totalorder %s1023_s22, 1 }
 0x233   : > { %845 = vmatprep.subr.bf16.mxu0 %v947_v16  ;;  %861 = vmatprep.mubr.msk.bf16.mxu0 %vm948_vm2, %v947_v16  ;;  %v915_v19 = vld [vmem:[%s1042_s14 + $0x18] sm:$0xff]   ;;  %v916_v20 = vld [vmem:[%s1042_s14 + $0x20] sm:$0xff]   ;;  %v917_v21 = vld [vmem:[%s1042_s14 + $0x28] sm:$0xff]   ;;  %s627_s23 = sld [smem:[#allocation6]] (!%p829_p9) }
 0x234   : > { %846 = vmatpush3.bf16.xpose.msra.mxu0 %v912_v15  ;;  %v918_v22 = vld [vmem:[%s1042_s14 + $0x30] sm:$0xff]   ;;  %v919_v23 = vld [vmem:[%s1042_s14 + $0x38] sm:$0xff]   ;;  %v513_v24 = vld [vmem:[#allocation2] sm:$0xff] }
 0x235   : > { %847 = vmatprep.subr.bf16.mxu0 %v947_v16  ;;  %v664_v31 = vld [vmem:[#allocation3] sm:$0xff] (!%p829_p9) }
 0x239   : > { %s628_s24 = sshra.s32 (!%p829_p9), %s627_s23, 3 }
 0x23a   : > { %s830_s27 = sshll.u32 (!%p829_p9), %s628_s24, 2 }
 0x23b   : > { %s631_s29 = scalar_lea.vmem (!%p829_p9), %s1156_s11, %s830_s27 }
 0x23c   : > { %848 = vmatpush3.bf16.xpose.msra.mxu0 %v913_v17  ;;  %665 = vst [vmem:[%s631_s29] sm:$0xff] (!%p829_p9), %v664_v31 }
 0x23d   : > { %849 = vmatprep.subr.bf16.mxu0 %v947_v16 }
 0x244   : > { %850 = vmatpush3.bf16.xpose.msra.mxu0 %v914_v18 }
 0x245   : > { %851 = vmatprep.subr.bf16.mxu0 %v947_v16 }
 0x24c   : > { %852 = vmatpush3.bf16.xpose.msra.mxu0 %v915_v19 }
 0x24d   : > { %853 = vmatprep.subr.bf16.mxu0 %v947_v16 }
 0x254   : > { %854 = vmatpush3.bf16.xpose.msra.mxu0 %v916_v20 }
 0x255   : > { %855 = vmatprep.subr.bf16.mxu0 %v947_v16 }
 0x25c   : > { %856 = vmatpush3.bf16.xpose.msra.mxu0 %v917_v21 }
 0x25d   : > { %857 = vmatprep.subr.bf16.mxu0 %v947_v16 }
 0x264   : > { %858 = vmatpush3.bf16.xpose.msra.mxu0 %v918_v22 }
 0x265   : > { %859 = vmatprep.subr.bf16.mxu0 %v947_v16 }
 0x26c   : > { %860 = vmatpush3.bf16.xpose.msra.mxu0 %v919_v23 }
 0x273   : > { %862 = vmatmul.mubr.bf16.vlgmr.msra.gmra.mrb[0].mxu0 %v513_v24 }
 0x345   : > { %626 = sbr.rel (%p829_p9) target bundleno = 847 (0x34f), region = 52 }
 0x346   : > { %v612_v25 = vpop.f32.mrb[0].mxu0 }
 0x347   : > { %v619_v26 = vmul.f32 14.285714, %v612_v25  ;;  %v863_v27 = vpop.f32.mrb[1].mxu0 }
 0x348   : > { %v615_v28 = vpop.f32.mrb[2].mxu0 }
 0x349   : > { %621 = vst [vmem:[%s1044_s15] sm:$0xff] %v619_v26  ;;  %v620_v29 = vmul.f32 14.285714, %v615_v28  ;;  %v864_v30 = vpop.f32.mrb[3].mxu0 }
 0x34b   : > { %622 = vst [vmem:[%s1044_s15 + $0x8] sm:$0xff] %v620_v29 }
 0x34c   : > { %673 = vsyncadd [#allocation4], 128 }
 0x34d   : > { %932 = dma.done.wait [#allocation4], 128 }
 0x34e   : > { %933 = vsyncadd [#allocation4], 4294967168 }
 0x34f PF: > { %687 = sbr.rel (!%p1034_p4) target bundleno = 855 (0x357), region = 94  ;;  %s832_s30 = sshll.u32 (%p1034_p4), %s1023_s22, 3 }
 0x350   : > { %s689_s16 = scalar_lea.vmem (%p1034_p4), %s1153_s8, %s832_s30 }
 0x353   : > { %v719_v32 = vld [vmem:[%s1044_s15] sm:$0xff] (%p1034_p4) }
 0x354   : > { %720 = vst [vmem:[%s689_s16] sm:$0xff] (%p1034_p4), %v719_v32 }
 0x355   : > { %v721_v33 = vld [vmem:[%s1044_s15 + $0x8] sm:$0xff] (%p1034_p4) }
 0x356   : > { %722 = vst [vmem:[%s689_s16 + $0x10] sm:$0xff] %v721_v33 }
 0x357 PF: > { %p20_p10 = scmp.ge.s32.totalorder %s1025_s0, 4   ;;  %s1158_s19 = smov %s940_s20 }
 0x358   : > { %s1159_s20 = smov %s1032_s25  ;;  %s1160_s21 = smov %s1025_s0 }
 0x359   :  { %22 = sbr.rel (!%p20_p10) target bundleno = 4 (0x4), region = 187 }
 0x360   :  { %753 = vsyncmov [#allocation4] }
 0x363   :  { %s754_s22 = vpop.sfrf %753 }
 0x364   :  { %p835_p11 = scmp.ne.s32.totalorder %s754_s22, 0 }
 0x366   :  { %758 = shalt.err (%p835_p11)  }

</bundles_post_ra>
